<compile_context>
chip_gen: v6e
topology: v6e:2x2x1
jax: 0.10.0
libtpu: 0.0.40
codegen_flags: <defaults>
</compile_context>

<pallas_src>
import jax
import jax.numpy as jnp
from jax import lax
from jax.experimental import pallas as pl
from jax.experimental.pallas import tpu as pltpu

# ---------------- sizes (small, consistent with the module) ----------------
B = 8      # batch
G = 8      # num element-pair groups == ESGGR.num_feat
P = 128    # padded number of atom pairs per group
H = 32     # hidden width of the user-supplied layer_list Linear layers
BN_EPS = 1e-5

_PAD_SENTINEL = 3.4e38         # padded distance -> z << 0 -> tanh == -1 -> lor == 0
_TB_CAP = 2048                 # ~8 MiB x block; safe on v7x (64 MiB VMEM), ample on v5e/v6e
_VMEM_LIMIT = 48 * 1024 * 1024 # stays under v7x physical VMEM; v5e/v6e have headroom


def _batch_tile(b, cap=_TB_CAP):
    """Batch tile: whole batch if small, else the largest multiple of 8 that
    evenly divides b and fits under the cap (keeps (TB, G)/(TB, H) output
    blocks sublane-aligned)."""
    if b <= cap:
        return b
    for tb in range(cap - cap % 8, 0, -8):
        if b % tb == 0:
            return tb
    return b


# --------------------------- kernel 1: ESGGR --------------------------------
def esggr_kernel(x_ref, kappa_ref, klogeta_ref, feat_ref):
    # Lorentz kernel in the EUP-minimal sigmoid/tanh form:
    #   1/(1+(d/eta)^kappa) = sigmoid(kappa*log(eta) - kappa*log(d))
    #                       = 0.5*(1 + tanh(z/2))
    # Padded (zero) distances map to a huge sentinel: z becomes very negative,
    # tanh saturates to exactly -1 and the contribution is exactly 0 -- no
    # separate mask / convert / multiply in the hot B*G*P loop.
    x = x_ref[...]                                        # (TB, G, P) f32
    logd = jnp.log(jnp.where(x > 0.0, x, _PAD_SENTINEL))  # finite everywhere
    z = klogeta_ref[...] - kappa_ref[...] * logd          # (G,P) bcast over TB (free)
    lor = 0.5 * (jnp.tanh(0.5 * z) + 1.0)                 # saturates, never inf/nan
    feat_ref[...] = jnp.sum(lor, axis=-1)                 # (TB, G)


# ----------------- kernel 2: BatchNorm (apply) + hidden MLP -----------------
def bn_mlp_kernel(feat_ref, scale_ref, shift_ref,
                  w1_ref, b1_ref, w2_ref, b2_ref, hid_ref):
    # BatchNorm1d with whole-batch statistics folded into scale/shift by the
    # wrapper: scale = gamma * rsqrt(var + eps), shift = beta - mean * scale.
    h = feat_ref[...] * scale_ref[...] + shift_ref[...]                 # (TB, G)
    h = jnp.maximum(
        jnp.dot(h, w1_ref[...], preferred_element_type=jnp.float32) + b1_ref[...], 0.0)
    h = jnp.maximum(
        jnp.dot(h, w2_ref[...], preferred_element_type=jnp.float32) + b2_ref[...], 0.0)
    hid_ref[...] = h                                                    # (TB, H)


# ------------------------------- wrapper ------------------------------------
def awegnn_forward(x, params, *, tb_cap=_TB_CAP):
    b, g, p = x.shape
    hdim = params["w1"].shape[1]
    tb = _batch_tile(b, tb_cap)
    nb = pl.cdiv(b, tb)

    # Lane-dense per-group Lorentz constants (G, P): tiny, DMA'd once
    # (constant index map), broadcast over the leading batch dim in-kernel.
    kappa = params["kappa"].reshape(g, 1).astype(jnp.float32)
    klogeta = kappa * jnp.log(params["eta"].reshape(g, 1).astype(jnp.float32))
    kappa_gp = jnp.broadcast_to(kappa, (g, p))
    klogeta_gp = jnp.broadcast_to(klogeta, (g, p))

    esggr_cost = pl.CostEstimate(
        flops=int(5 * b * g * p),
        transcendentals=int(2 * b * g * p),                 # log + tanh per element
        bytes_accessed=int(4 * (b * g * p + b * g + 2 * g * p)),
    )
    feat = pl.pallas_call(
        esggr_kernel,
        out_shape=jax.ShapeDtypeStruct((b, g), jnp.float32),
        grid=(nb,),
        in_specs=[
            pl.BlockSpec((tb, g, p), lambda i: (i, 0, 0)),  # batch-tiled distances
            pl.BlockSpec((g, p), lambda i: (0, 0)),         # resident constants
            pl.BlockSpec((g, p), lambda i: (0, 0)),
        ],
        out_specs=pl.BlockSpec((tb, g), lambda i: (i, 0)),
        compiler_params=pltpu.CompilerParams(
            dimension_semantics=("parallel",),
            vmem_limit_bytes=_VMEM_LIMIT),
        cost_estimate=esggr_cost,
    )(x, kappa_gp, klogeta_gp)

    # ---- BatchNorm1d training-mode statistics over the WHOLE batch (pass 2
    # of the two-pass BN).  Tiny (B*G) XLA work; keeps PyTorch semantics no
    # matter how the batch is tiled or sharded across TensorCores.
    mean = jnp.mean(feat, axis=0, keepdims=True)                    # (1, G)
    var = jnp.mean((feat - mean) ** 2, axis=0, keepdims=True)       # biased, as PyTorch
    scale = params["gamma"] * lax.rsqrt(var + BN_EPS)               # (1, G)
    shift = params["beta"] - mean * scale                           # (1, G)

    mlp_cost = pl.CostEstimate(
        flops=int(2 * b * (g * hdim + hdim * hdim) + 6 * b * hdim),
        transcendentals=0,
        bytes_accessed=int(4 * (b * g + b * hdim + g * hdim
                                + hdim * hdim + 4 * g + 2 * hdim)),
    )
    const2 = lambda i: (0, 0)
    hid = pl.pallas_call(
        bn_mlp_kernel,
        out_shape=jax.ShapeDtypeStruct((b, hdim), jnp.float32),
        grid=(nb,),
        in_specs=[
            pl.BlockSpec((tb, g), lambda i: (i, 0)),    # batch-tiled features
            pl.BlockSpec((1, g), const2),               # folded BN scale
            pl.BlockSpec((1, g), const2),               # folded BN shift
            pl.BlockSpec((g, hdim), const2),            # resident weights
            pl.BlockSpec((1, hdim), const2),
            pl.BlockSpec((hdim, hdim), const2),
            pl.BlockSpec((1, hdim), const2),
        ],
        out_specs=pl.BlockSpec((tb, hdim), lambda i: (i, 0)),
        compiler_params=pltpu.CompilerParams(
            dimension_semantics=("parallel",),
            vmem_limit_bytes=_VMEM_LIMIT),
        cost_estimate=mlp_cost,
    )(feat, scale, shift, params["w1"], params["b1"], params["w2"], params["b2"])

    # output_layer Linear(H, 1): trivial matvec + bias kept in the wrapper so
    # the Pallas outputs stay lane-dense (per review).
    return hid @ params["wo"] + params["bo"]


# ------------------------------ reference -----------------------------------
def awegnn_reference(x, prm):
    """Pure-JAX reference using the original Lorentz formulation."""
    b, g, p = x.shape
    eta = prm["eta"].reshape(1, g, 1)
    kappa = prm["kappa"].reshape(1, g, 1)
    mask = x > 0.0
    d = jnp.where(mask, x, 1.0)
    lor = 1.0 / (1.0 + (d / eta) ** kappa)
    feat = jnp.sum(jnp.where(mask, lor, 0.0), axis=-1)
    mean = jnp.mean(feat, axis=0, keepdims=True)
    var = jnp.mean((feat - mean) ** 2, axis=0, keepdims=True)
    hid = (feat - mean) / jnp.sqrt(var + BN_EPS) * prm["gamma"] + prm["beta"]
    hid = jnp.maximum(hid @ prm["w1"] + prm["b1"], 0.0)
    hid = jnp.maximum(hid @ prm["w2"] + prm["b2"], 0.0)
    return hid @ prm["wo"] + prm["bo"]


def init_params(key):
    ks = jax.random.split(key, 8)
    # ESGGR learnable parameters: tau_rng=(0.5, 1.5) -> eta ~ U[0.5, 1.5],
    # kappa_rng=(2, 5) -> kappa ~ U[2, 5]   (one pair per group)
    eta = jax.random.uniform(ks[0], (G, 1), jnp.float32, 0.5, 1.5)
    kappa = jax.random.uniform(ks[1], (G, 1), jnp.float32, 2.0, 5.0)
    # BatchNorm1d affine params (PyTorch default init: gamma=1, beta=0)
    gamma = jnp.ones((1, G), jnp.float32)
    beta = jnp.zeros((1, G), jnp.float32)

    # Linear layers (weights stored as (in, out), i.e. already transposed)
    def lin(k, fan_in, fan_out):
        bound = 1.0 / jnp.sqrt(fan_in)
        kw, kb = jax.random.split(k)
        w = jax.random.uniform(kw, (fan_in, fan_out), jnp.float32, -bound, bound)
        b_ = jax.random.uniform(kb, (1, fan_out), jnp.float32, -bound, bound)
        return w, b_

    w1, b1 = lin(ks[2], G, H)
    w2, b2 = lin(ks[3], H, H)
    wo, bo = lin(ks[4], H, 1)
    return dict(eta=eta, kappa=kappa, gamma=gamma, beta=beta,
                w1=w1, b1=b1, w2=w2, b2=b2, wo=wo, bo=bo)


if __name__ == "__main__":
    key = jax.random.PRNGKey(0)
    k_x, k_mask, k_p = jax.random.split(key, 3)

    # Synthetic pairwise distances in [1, 11) Angstrom, with ~25% zero padding.
    x = jax.random.uniform(k_x, (B, G, P), jnp.float32, 1.0, 11.0)
    pad = jax.random.uniform(k_mask, (B, G, P)) < 0.25
    x = jnp.where(pad, 0.0, x)

    params = init_params(k_p)

    out = awegnn_forward(x, params)
    out = jax.block_until_ready(out)

    ref = awegnn_reference(x, params)
    assert out.shape == (B, 1), out.shape
    assert jnp.allclose(out, ref, atol=1e-3, rtol=1e-3), (
        f"max abs err {jnp.max(jnp.abs(out - ref))}")

    print("KERNEL_OK")
</pallas_src>

<mosaic_0001>
module attributes {stable_mosaic.version = 11 : i64} {
  func.func @esggr_kernel(%arg0: i32, %arg1: memref<8x8x128xf32, #tpu.memory_space<vmem>>, %arg2: memref<8x128xf32, #tpu.memory_space<vmem>>, %arg3: memref<8x128xf32, #tpu.memory_space<vmem>>, %arg4: memref<8x8xf32, #tpu.memory_space<vmem>>) attributes {dimension_semantics = [#tpu.dimension_semantics<parallel>], iteration_bounds = array<i64: 1>, scalar_prefetch = 0 : i64, scratch_operands = 0 : i64, tpu.core_type = #tpu.core_type<tc>, window_params = [{transform_indices = @transform_0, window_bounds = array<i64: 8, 8, 128>}, {pipeline_mode = #tpu.pipeline_mode<synchronous>, transform_indices = @transform_1, window_bounds = array<i64: 8, 128>}, {pipeline_mode = #tpu.pipeline_mode<synchronous>, transform_indices = @transform_2, window_bounds = array<i64: 8, 128>}, {transform_indices = @transform_3, window_bounds = array<i64: 8, 8>}]} {
    %c0 = arith.constant 0 : index
    %c0_0 = arith.constant 0 : index
    %c0_1 = arith.constant 0 : index
    %0 = vector.load %arg1[%c0, %c0_0, %c0_1] : memref<8x8x128xf32, #tpu.memory_space<vmem>>, vector<8x8x128xf32>
    %cst = arith.constant 0.000000e+00 : f32
    %1 = vector.broadcast %cst : f32 to vector<8x8x128xf32>
    %2 = arith.cmpf ogt, %0, %1 : vector<8x8x128xf32>
    %cst_2 = arith.constant 3.400000e+38 : f32
    %3 = vector.broadcast %cst_2 : f32 to vector<8x8x128xf32>
    %4 = arith.select %2, %0, %3 : vector<8x8x128xi1>, vector<8x8x128xf32>
    %5 = math.log %4 : vector<8x8x128xf32>
    %c0_3 = arith.constant 0 : index
    %c0_4 = arith.constant 0 : index
    %6 = vector.load %arg3[%c0_3, %c0_4] : memref<8x128xf32, #tpu.memory_space<vmem>>, vector<8x128xf32>
    %c0_5 = arith.constant 0 : index
    %c0_6 = arith.constant 0 : index
    %7 = vector.load %arg2[%c0_5, %c0_6] : memref<8x128xf32, #tpu.memory_space<vmem>>, vector<8x128xf32>
    %8 = vector.shape_cast %7 : vector<8x128xf32> to vector<1x8x128xf32>
    %9 = vector.broadcast %8 : vector<1x8x128xf32> to vector<8x8x128xf32>
    %10 = arith.mulf %9, %5 : vector<8x8x128xf32>
    %11 = vector.shape_cast %6 : vector<8x128xf32> to vector<1x8x128xf32>
    %12 = vector.broadcast %11 : vector<1x8x128xf32> to vector<8x8x128xf32>
    %13 = arith.subf %12, %10 : vector<8x8x128xf32>
    %cst_7 = arith.constant 5.000000e-01 : f32
    %14 = vector.broadcast %cst_7 : f32 to vector<8x8x128xf32>
    %15 = arith.mulf %14, %13 : vector<8x8x128xf32>
    %16 = math.tanh %15 : vector<8x8x128xf32>
    %cst_8 = arith.constant 1.000000e+00 : f32
    %17 = vector.broadcast %cst_8 : f32 to vector<8x8x128xf32>
    %18 = arith.addf %16, %17 : vector<8x8x128xf32>
    %cst_9 = arith.constant 5.000000e-01 : f32
    %19 = vector.broadcast %cst_9 : f32 to vector<8x8x128xf32>
    %20 = arith.mulf %19, %18 : vector<8x8x128xf32>
    %cst_10 = arith.constant dense<0.000000e+00> : vector<8x8xf32>
    %21 = vector.multi_reduction <add>, %20, %cst_10 [2] : vector<8x8x128xf32> to vector<8x8xf32>
    %c0_11 = arith.constant 0 : index
    %c0_12 = arith.constant 0 : index
    %22 = vector.load %arg4[%c0_11, %c0_12] : memref<8x8xf32, #tpu.memory_space<vmem>>, vector<8x8xf32>
    tpu.vector_store %arg4[%c0_11, %c0_12], %21 {strides = array<i32>} : memref<8x8xf32, #tpu.memory_space<vmem>>, vector<8x8xf32>,
    return
  }
  func.func @transform_0(%arg0: i32) -> (i32, i32, i32) {
    %c0_i32 = arith.constant 0 : i32
    %c0_i32_0 = arith.constant 0 : i32
    %c0_i32_1 = arith.constant 0 : i32
    return %arg0, %c0_i32, %c0_i32_0 : i32, i32, i32
  }
  func.func @transform_1(%arg0: i32) -> (i32, i32) {
    %c0_i32 = arith.constant 0 : i32
    %c0_i32_0 = arith.constant 0 : i32
    %c0_i32_1 = arith.constant 0 : i32
    return %c0_i32, %c0_i32_0 : i32, i32
  }
  func.func @transform_2(%arg0: i32) -> (i32, i32) {
    %c0_i32 = arith.constant 0 : i32
    %c0_i32_0 = arith.constant 0 : i32
    %c0_i32_1 = arith.constant 0 : i32
    return %c0_i32, %c0_i32_0 : i32, i32
  }
  func.func @transform_3(%arg0: i32) -> (i32, i32) {
    %c0_i32 = arith.constant 0 : i32
    %c0_i32_0 = arith.constant 0 : i32
    return %arg0, %c0_i32 : i32, i32
  }
}

</mosaic_0001>

<bundles_post_ra>
// kernel: tpu_custom_call.1
= control target key start
LH: loop header
LB: loop body
LE: loop exit
PB: predicated region body
PF: predicated region fallthrough
CT: control target
= control target key end

     0   :  { %8 = vsyncpa [#allocation3], 0  ;;  %s395_s0 = inlined_call_operand.hbm [shape: f32[8,8,128], index: 0, kind: input, shape index: {}]   ;;  %s396_s1 = inlined_call_operand.hbm [shape: f32[8,128], index: 1, kind: input, shape index: {}]   ;;  %s397_s2 = inlined_call_operand.hbm [shape: f32[8,128], index: 2, kind: input, shape index: {}]   ;;  %s398_s3 = inlined_call_operand.hbm [shape: f32[8,8], index: 3, kind: output, shape index: {}]  }
   0x1   :  { %9 = vsyncpa [#allocation6], 0 }
   0x2   :  { %10 = vsyncpa [#allocation4], 0  ;;  %s357_s12 = smov [#allocation5]   ;;  %s358_s14 = smov [#allocation2]  }
   0x3   :  { %s29_s13 = sshll.u32 %s357_s12, 4  ;;  %s16_s15 = sshll.u32 %s358_s14, 4  ;;  %s30_s13 = int_to_ptr.vmem [resolvable:$true] %s29_s13  ;;  %s17_s15 = int_to_ptr.vmem [resolvable:$true] %s16_s15 }
   0x4   :  { %s279_s16 = scalar_lea.vmem %s30_s13, 128  ;;  %p284_p1 = scmp.lt.s32.totalorder %s30_s13, %s30_s13 }
   0x5   :  { %p280_p0 = scmp.ne.s32.totalorder %s30_s13, %s279_s16  ;;  %p285_p2 = scmp.lt.s32.totalorder %s279_s16, %s279_s16 }
   0x7   :  { %p286_p3 = por %p285_p2, %p284_p1 }
   0x9   :  { %p287_p4 = pnand %p286_p3, %p280_p0 }
   0xb   :  { %290 = shalt.err (!%p287_p4)
}
   0xc   :  { %32 = dma.hbm_to_vmem [thread:$0]  %s396_s1, 128, %s30_s13, [#allocation6]  }
   0xd   :  { %s299_s19 = scalar_lea.vmem %s17_s15, 1024  ;;  %p304_p6 = scmp.lt.s32.totalorder %s17_s15, %s17_s15 }
   0xe   :  { %p300_p5 = scmp.ne.s32.totalorder %s17_s15, %s299_s19  ;;  %p305_p7 = scmp.lt.s32.totalorder %s299_s19, %s299_s19 }
  0x10   :  { %p306_p8 = por %p305_p7, %p304_p6 }
  0x12   :  { %p307_p9 = pnand %p306_p8, %p300_p5 }
  0x14   :  { %310 = shalt.err (!%p307_p9)
}
  0x15   :  { %s359_s20 = smov 128   ;;  %s360_s21 = smov 8  }
  0x16   :  { %22 = dma.hbm_to_vmem [thread:$0]  %s395_s0, 1024, %s17_s15, [#allocation3], %s359_s20, %s359_s20, %s360_s21  }
  0x17   :  { %s361_s24 = smov [#allocation7]  }
  0x18   :  { %s39_s25 = sshll.u32 %s361_s24, 4  ;;  %s40_s25 = int_to_ptr.vmem [resolvable:$true] %s39_s25 }
  0x19   :  { %s319_s26 = scalar_lea.vmem %s40_s25, 128  ;;  %p324_p11 = scmp.lt.s32.totalorder %s40_s25, %s40_s25 }
  0x1a   :  { %p320_p10 = scmp.ne.s32.totalorder %s40_s25, %s319_s26  ;;  %p325_p12 = scmp.lt.s32.totalorder %s319_s26, %s319_s26 }
  0x1c   :  { %p326_p13 = por %p325_p12, %p324_p11 }
  0x1e   :  { %p327_p0 = pnand %p326_p13, %p320_p10 }
  0x20   :  { %330 = shalt.err (!%p327_p0)
}
  0x21   :  { %42 = dma.hbm_to_vmem [thread:$0]  %s397_s2, 128, %s40_s25, [#allocation6]  }
  0x22   :  { %351 = dma.done.wait [#allocation3], 1024  }
  0x23   :  { %352 = vsyncadd [#allocation3], 4294966272 }
  0x24   :  { %353 = dma.done.wait [#allocation6], 256  }
  0x25   :  { %354 = vsyncadd [#allocation6], 4294967040  ;;  %v52_v0 = vld [vmem:[#allocation2] sm:$0xff]  ;;  %v54_v1 = vld [vmem:[#allocation2 + $0x10] sm:$0xff]  ;;  %vm200_vm8 = vcmask 1041409   ;;  %vm202_vm9 = vcmask 1042434  }
  0x26   :  { %vm60_vm0 = vcmp.gt.f32.partialorder %v52_v0, 0.0  ;;  %v53_v2 = vld [vmem:[#allocation2 + $0x8] sm:$0xff]  ;;  %v55_v3 = vld [vmem:[#allocation2 + $0x18] sm:$0xff]  ;;  %vm62_vm1 = vcmp.gt.f32.partialorder %v54_v1, 0.0  ;;  %v56_v5 = vld [vmem:[#allocation2 + $0x20] sm:$0xff]  ;;  %vm204_vm10 = vcmask 1043459  }
  0x27   :  { %v68_v4 = vsel %vm60_vm0, %v52_v0, 3.4e+38  ;;  %vm61_vm2 = vcmp.gt.f32.partialorder %v53_v2, 0.0  ;;  %vm63_vm3 = vcmp.gt.f32.partialorder %v55_v3, 0.0  ;;  %v70_v6 = vsel %vm62_vm1, %v54_v1, 3.4e+38 }
  0x28   :  { %239 = vlog2.f32 %v68_v4  ;;  %v69_v7 = vsel %vm61_vm2, %v53_v2, 3.4e+38  ;;  %v71_v8 = vsel %vm63_vm3, %v55_v3, 3.4e+38  ;;  %vm64_vm4 = vcmp.gt.f32.partialorder %v56_v5, 0.0  ;;  %v57_v9 = vld [vmem:[#allocation2 + $0x28] sm:$0xff] }
  0x29   :  { %241 = vlog2.f32 %v70_v6  ;;  %v58_v10 = vld [vmem:[#allocation2 + $0x30] sm:$0xff]  ;;  %v59_v11 = vld [vmem:[#allocation2 + $0x38] sm:$0xff]  ;;  %v72_v12 = vsel %vm64_vm4, %v56_v5, 3.4e+38  ;;  %vm65_vm5 = vcmp.gt.f32.partialorder %v57_v9, 0.0  ;;  %v93_v17 = vld [vmem:[#allocation5] sm:$0xff] }
  0x2a   :  { %243 = vlog2.f32 %v69_v7  ;;  %vm66_vm6 = vcmp.gt.f32.partialorder %v58_v10, 0.0  ;;  %v73_v13 = vsel %vm65_vm5, %v57_v9, 3.4e+38  ;;  %vm67_vm7 = vcmp.gt.f32.partialorder %v59_v11, 0.0  ;;  %v92_v21 = vld [vmem:[#allocation7] sm:$0xff]  ;;  %s362_s0 = smov [#allocation8]  }
  0x2b   :  { %245 = vlog2.f32 %v71_v8  ;;  %v74_v14 = vsel %vm66_vm6, %v58_v10, 3.4e+38  ;;  %v75_v15 = vsel %vm67_vm7, %v59_v11, 3.4e+38  ;;  %vm206_vm11 = vcmask 1044484   ;;  %s223_s2 = sshll.u32 %s362_s0, 4  ;;  %s224_s2 = int_to_ptr.vmem [resolvable:$true] %s223_s2 }
  0x2c   :  { %247 = vlog2.f32 %v72_v12  ;;  %vm208_vm12 = vcmask 1045509   ;;  %vm210_vm13 = vcmask 1046534   ;;  %vm212_vm14 = vcmask 1047559   ;;  %s331_s28 = scalar_lea.vmem %s224_s2, 128  ;;  %p336_p2 = scmp.lt.s32.totalorder %s224_s2, %s224_s2 }
  0x2d   :  { %249 = vlog2.f32 %v73_v13  ;;  %vm215_vm15 = vcmask 64512   ;;  %p332_p1 = scmp.ne.s32.totalorder %s224_s2, %s331_s28  ;;  %p337_p3 = scmp.lt.s32.totalorder %s331_s28, %s331_s28 }
  0x2e   :  { %251 = vlog2.f32 %v74_v14 }
  0x2f   :  { %253 = vlog2.f32 %v75_v15  ;;  %p338_p4 = por %p337_p3, %p336_p2 }
  0x31   :  { %p339_p5 = pnand %p338_p4, %p332_p1 }
  0x35   :  { %v240_v16 = vpop.eup %239 }
  0x36   :  { %v242_v18 = vpop.eup %241  ;;  %v77_v19 = vmul.f32 0.6931472, %v240_v16 }
  0x37   :  { %v244_v20 = vpop.eup %243  ;;  %v81_v22 = vmul.f32 0.6931472, %v242_v18  ;;  %v166_v18 = vlaneseq }
  0x38   :  { %v246_v23 = vpop.eup %245  ;;  %v94_v24 = vmul.f32 %v93_v17, %v77_v19  ;;  %v79_v25 = vmul.f32 0.6931472, %v244_v20 }
  0x39   :  { %v248_v26 = vpop.eup %247  ;;  %v96_v27 = vmul.f32 %v93_v17, %v81_v22  ;;  %v83_v28 = vmul.f32 0.6931472, %v246_v23  ;;  %v167_v19 = vand.u32 127, %v166_v18  ;;  %v169_v20 = vshrl.u32 %v166_v18, 7 }
  0x3a   :  { %v250_v29 = vpop.eup %249  ;;  %v102_v30 = vsub.f32 %v92_v21, %v94_v24  ;;  %v95_v31 = vmul.f32 %v93_v17, %v79_v25  ;;  %v85_v32 = vmul.f32 0.6931472, %v248_v26 }
  0x3b   :  { %v252_v33 = vpop.eup %251  ;;  %v104_v34 = vsub.f32 %v92_v21, %v96_v27  ;;  %v97_v35 = vmul.f32 %v93_v17, %v83_v28  ;;  %v87_v36 = vmul.f32 0.6931472, %v250_v29  ;;  %v170_v22 = vsub.s32 %v167_v19, %v169_v20 }
  0x3c   :  { %v254_v37 = vpop.eup %253  ;;  %v110_v38 = vmul.f32 0.5, %v102_v30  ;;  %v103_v39 = vsub.f32 %v92_v21, %v95_v31  ;;  %v98_v40 = vmul.f32 %v93_v17, %v85_v32  ;;  %v89_v41 = vmul.f32 0.6931472, %v252_v33 }
  0x3d   :  { %v112_v42 = vmul.f32 0.5, %v104_v34  ;;  %v105_v43 = vsub.f32 %v92_v21, %v97_v35  ;;  %v99_v44 = vmul.f32 %v93_v17, %v87_v36  ;;  %v91_v45 = vmul.f32 0.6931472, %v254_v37 }
  0x3e   :  { %255 = vtanh.f32 %v110_v38  ;;  %v111_v46 = vmul.f32 0.5, %v103_v39  ;;  %v106_v47 = vsub.f32 %v92_v21, %v98_v40  ;;  %v100_v48 = vmul.f32 %v93_v17, %v89_v41 }
  0x3f   :  { %257 = vtanh.f32 %v112_v42  ;;  %v113_v49 = vmul.f32 0.5, %v105_v43  ;;  %v107_v50 = vsub.f32 %v92_v21, %v99_v44  ;;  %v101_v51 = vmul.f32 %v93_v17, %v91_v45 }
  0x40   :  { %259 = vtanh.f32 %v111_v46  ;;  %v114_v52 = vmul.f32 0.5, %v106_v47  ;;  %v108_v53 = vsub.f32 %v92_v21, %v100_v48 }
  0x41   :  { %261 = vtanh.f32 %v113_v49  ;;  %v115_v54 = vmul.f32 0.5, %v107_v50  ;;  %v109_v55 = vsub.f32 %v92_v21, %v101_v51 }
  0x42   :  { %263 = vtanh.f32 %v114_v52  ;;  %v116_v56 = vmul.f32 0.5, %v108_v53 }
  0x43   :  { %265 = vtanh.f32 %v115_v54  ;;  %v117_v57 = vmul.f32 0.5, %v109_v55 }
  0x44   :  { %267 = vtanh.f32 %v116_v56 }
  0x45   :  { %269 = vtanh.f32 %v117_v57 }
  0x4b   :  { %v256_v58 = vpop.eup %255 }
  0x4c   :  { %v258_v59 = vpop.eup %257  ;;  %v126_v60 = vadd.f32 1.0, %v256_v58 }
  0x4d   :  { %v260_v61 = vpop.eup %259  ;;  %v128_v62 = vadd.f32 1.0, %v258_v59 }
  0x4e   :  { %v262_v63 = vpop.eup %261  ;;  %v134_v0 = vmul.f32 0.5, %v126_v60  ;;  %v127_v1 = vadd.f32 1.0, %v260_v61 }
  0x4f   :  { %v264_v2 = vpop.eup %263  ;;  %v136_v3 = vmul.f32 0.5, %v128_v62  ;;  %v129_v4 = vadd.f32 1.0, %v262_v63 }
  0x50   :  { %v266_v5 = vpop.eup %265  ;;  %142 = vadd.xlane.f32.xlu0 %v134_v0  ;;  %v135_v6 = vmul.f32 0.5, %v127_v1  ;;  %v130_v7 = vadd.f32 1.0, %v264_v2 }
  0x51   :  { %v268_v8 = vpop.eup %267  ;;  %146 = vadd.xlane.f32.xlu1 %v136_v3  ;;  %v137_v9 = vmul.f32 0.5, %v129_v4  ;;  %v131_v10 = vadd.f32 1.0, %v266_v5 }
  0x52   :  { %v270_v11 = vpop.eup %269  ;;  %v138_v12 = vmul.f32 0.5, %v130_v7  ;;  %v132_v13 = vadd.f32 1.0, %v268_v8 }
  0x53   :  { %v139_v14 = vmul.f32 0.5, %v131_v10  ;;  %v133_v15 = vadd.f32 1.0, %v270_v11 }
  0x54   :  { %144 = vadd.xlane.f32.xlu0 %v135_v6  ;;  %v140_v16 = vmul.f32 0.5, %v132_v13 }
  0x55   :  { %148 = vadd.xlane.f32.xlu1 %v137_v9  ;;  %v141_v17 = vmul.f32 0.5, %v133_v15 }
  0x58   :  { %150 = vadd.xlane.f32.xlu0 %v138_v12 }
  0x59   :  { %152 = vadd.xlane.f32.xlu1 %v139_v14 }
  0x5c   :  { %154 = vadd.xlane.f32.xlu0 %v140_v16 }
  0x5d   :  { %156 = vadd.xlane.f32.xlu1 %v141_v17 }
  0xd9   :  { %v143_v21 = vpop.xlane.xlu0 %142 }
  0xda   :  { %v147_v23 = vpop.xlane.xlu1 %146  ;;  %v171_v25 = vrot.slane %v143_v21, %v170_v22 }
  0xdb   :  { %v179_v28 = vrot.slane %v147_v23, %v170_v22 }
  0xdd   :  { %v145_v24 = vpop.xlane.xlu0 %144 }
  0xde   :  { %v175_v26 = vrot.slane %v145_v24, %v170_v22  ;;  %v149_v27 = vpop.xlane.xlu1 %148 }
  0xdf   :  { %v183_v29 = vrot.slane %v149_v27, %v170_v22 }
  0xe0   :  { %v201_v30 = vsel %vm200_vm8, %v175_v26, %v171_v25 }
  0xe1   :  { %v203_v31 = vsel %vm202_vm9, %v179_v28, %v201_v30  ;;  %v151_v32 = vpop.xlane.xlu0 %150 }
  0xe2   :  { %v205_v33 = vsel %vm204_vm10, %v183_v29, %v203_v31  ;;  %v187_v34 = vrot.slane %v151_v32, %v170_v22  ;;  %v153_v35 = vpop.xlane.xlu1 %152 }
  0xe3   :  { %v191_v36 = vrot.slane %v153_v35, %v170_v22 }
  0xe4   :  { %v207_v37 = vsel %vm206_vm11, %v187_v34, %v205_v33 }
  0xe5   :  { %v155_v38 = vpop.xlane.xlu0 %154  ;;  %v209_v41 = vsel %vm208_vm12, %v191_v36, %v207_v37 }
  0xe6   :  { %v195_v39 = vrot.slane %v155_v38, %v170_v22  ;;  %v157_v40 = vpop.xlane.xlu1 %156 }
  0xe7   :  { %v199_v42 = vrot.slane %v157_v40, %v170_v22 }
  0xe8   :  { %v211_v43 = vsel %vm210_vm13, %v195_v39, %v209_v41 }
  0xe9   :  { %v213_v44 = vsel %vm212_vm14, %v199_v42, %v211_v43 }
  0xea   :  { %216 = vst.msk [vmem:[#allocation8] sm:$0xff] %vm215_vm15, %v213_v44 }
  0xeb   :  { %342 = shalt.err (!%p339_p5)
}
  0xec   :  { %226 = dma.vmem_to_hbm [thread:$0]  %s224_s2, 128, %s398_s3, [#allocation4]  }
  0xed   :  { %355 = dma.done.wait [#allocation4], 128  }
  0xee   :  { %356 = vsyncadd [#allocation4], 4294967168 }
  0xef   :  { %230 = vsyncpa [#allocation3], 1 }
  0xf0   :  { %231 = vsyncpa [#allocation6], 1 }
  0xf1   :  { %232 = vsyncpa [#allocation4], 1 }

</bundles_post_ra>
